<compile_context>
chip_gen: v5e
topology: v5e:2x2
jax: 0.10.0
libtpu: 0.0.40
codegen_flags: <defaults>
</compile_context>

<pallas_src>
import numpy as np

import jax
import jax.numpy as jnp
from jax.experimental import pallas as pl
from jax.experimental.pallas import tpu as pltpu


def _detection_kernel(pred_ref, off_ref, tab_ref, out_ref):
    # pred_ref: (A*C, tile_l) raw logits, native channel-major layout
    # off_ref : (2, tile_l)   rows: x_cell*stride, y_cell*stride (per lane)
    # tab_ref : (A*C, 4)      cols: [is_wh, is_x, is_y, mul] per attribute row
    # out_ref : (tile_l, A*C) transformed predictions (transposed store)
    p = pred_ref[...].astype(jnp.float32)

    wh_f = tab_ref[:, 0:1]                       # (A*C, 1) f32 in {0, 1}
    is_x = tab_ref[:, 1:2]
    is_y = tab_ref[:, 2:3]
    mul = tab_ref[:, 3:4]                        # stride | anchor | 1

    # Single exp + one full-precision reciprocal instead of exp AND sigmoid:
    #   w,h rows -> exp(p); all other rows -> sigmoid(p) = 1 / (1 + exp(-p))
    is_wh = jnp.broadcast_to(wh_f, p.shape) > 0.5
    e = jnp.exp(jnp.where(is_wh, p, -p))
    sig = pl.reciprocal(1.0 + e, approx=False)
    t = jnp.where(is_wh, e, sig)

    # Precomputed per-lane cell offsets (already * stride); no % / // in-kernel.
    x_off = off_ref[0:1, :]                      # (1, tile_l)
    y_off = off_ref[1:2, :]

    # rows 0,1: sigmoid*stride + cell*stride ; rows 2,3: exp*anchor ; rest: sigmoid
    res = t * mul + is_x * x_off + is_y * y_off  # (A*C, tile_l)

    # Transposed store (XLU) so the (B, L, A*C) output is a free view of the
    # PyTorch (B, L*A, C) layout -- no post-kernel XLA transpose needed.
    out_ref[...] = res.T.astype(out_ref.dtype)


def _pick_lane_tile(L, B):
    """Largest pow2 multiple-of-128 tile dividing L (capped for v7x VMEM);
    full extent when L is not lane-aligned (G=13/26/52)."""
    if L % 128 != 0:
        return L
    cap = 4096  # keeps double-buffered in+out blocks well inside v7x's 64 MiB VMEM
    best = 128
    t = 128
    while t <= min(L, cap):
        if L % t == 0:
            best = t
        t *= 2
    # v7x megacore: ensure >=2 parallel blocks when B == 1.
    if B == 1 and best == L and (L // 2) % 128 == 0:
        best = L // 2
    return best


def detection_layer(x, input_dim, anchors, num_classes, confidence=None):
    # `confidence` kept for API parity with the PyTorch module; predict_transform
    # does not use it (it is only consumed later by write_results / NMS).
    B, Cin, G, G2 = x.shape
    assert G == G2
    A = len(anchors)
    C = 5 + num_classes
    assert Cin == A * C, "channel dim must equal num_anchors * (5 + num_classes)"
    stride = input_dim // G
    L = G * G
    AC = A * C

    # Native channel-major layout: free reshape of NCHW, no transpose, no cast.
    pred = x.reshape(B, AC, L)

    # Tiny per-attribute table (A*C, 4): [is_wh, is_x, is_y, mul]
    #   x,y rows -> mul = stride ; w,h rows -> mul = anchor ; others -> 1
    attr = np.arange(AC) % C
    is_wh = ((attr == 2) | (attr == 3)).astype(np.float32)
    is_x = (attr == 0).astype(np.float32)
    is_y = (attr == 1).astype(np.float32)
    anc = np.asarray(anchors, np.float32).reshape(A, 2)
    mul = np.ones((A, C), np.float32)
    mul[:, 0] = float(stride)
    mul[:, 1] = float(stride)
    mul[:, 2] = anc[:, 0]
    mul[:, 3] = anc[:, 1]
    tab = jnp.asarray(np.stack([is_wh, is_x, is_y, mul.reshape(AC)], axis=1))

    # Per-lane grid-cell offsets, pre-scaled by stride: (2, L) f32.
    lane = np.arange(L)
    offs = jnp.asarray(
        np.stack([(lane % G) * float(stride),
                  (lane // G) * float(stride)]).astype(np.float32))

    tile_l = _pick_lane_tile(L, B)
    n_tiles = L // tile_l

    out = pl.pallas_call(
        _detection_kernel,
        out_shape=jax.ShapeDtypeStruct((B, L, AC), jnp.float32),
        grid_spec=pltpu.PrefetchScalarGridSpec(
            num_scalar_prefetch=0,
            grid=(B, n_tiles),
            in_specs=[
                pl.BlockSpec((None, AC, tile_l), lambda b, t: (b, 0, t)),
                pl.BlockSpec((2, tile_l), lambda b, t: (0, t)),
                pl.BlockSpec((AC, 4), lambda b, t: (0, 0)),
            ],
            out_specs=pl.BlockSpec((None, tile_l, AC), lambda b, t: (b, t, 0)),
        ),
        compiler_params=pltpu.CompilerParams(
            dimension_semantics=("parallel", "parallel")),
    )(pred, offs, tab)

    # (B, L, A*C) -> (B, L*A, C) is a contiguous row-major view: free.
    return out.reshape(B, L * A, C)


def _reference(x, input_dim, anchors, num_classes):
    """Pure-JAX port of darknet predict_transform (for verification)."""
    B, Cin, G, _ = x.shape
    A = len(anchors)
    C = 5 + num_classes
    stride = input_dim // G
    p = x.reshape(B, A * C, G * G)
    p = jnp.transpose(p, (0, 2, 1)).reshape(B, G * G * A, C).astype(jnp.float32)

    anc = jnp.asarray(anchors, jnp.float32) / stride
    xs, ys = jnp.meshgrid(jnp.arange(G, dtype=jnp.float32),
                          jnp.arange(G, dtype=jnp.float32))
    xy = jnp.stack([xs.reshape(-1), ys.reshape(-1)], axis=1)      # (G*G, 2)
    xy = jnp.repeat(xy, A, axis=0)                                # (G*G*A, 2)
    anc_t = jnp.tile(anc, (G * G, 1))                             # (G*G*A, 2)

    out = p
    out = out.at[:, :, 0].set(jax.nn.sigmoid(p[:, :, 0]))
    out = out.at[:, :, 1].set(jax.nn.sigmoid(p[:, :, 1]))
    out = out.at[:, :, 4].set(jax.nn.sigmoid(p[:, :, 4]))
    out = out.at[:, :, :2].add(xy[None])
    out = out.at[:, :, 2:4].set(jnp.exp(p[:, :, 2:4]) * anc_t[None])
    out = out.at[:, :, 5:].set(jax.nn.sigmoid(p[:, :, 5:]))
    out = out.at[:, :, :4].multiply(float(stride))
    return out


if __name__ == "__main__":
    key = jax.random.PRNGKey(0)
    B, G, input_dim = 2, 16, 32                       # stride = 2, L = 256
    anchors = [(10.0, 13.0), (16.0, 30.0), (33.0, 23.0)]
    num_classes = 4
    A, C = len(anchors), 5 + num_classes              # channels = 3 * 9 = 27

    x = jax.random.normal(key, (B, A * C, G, G), dtype=jnp.float32)

    out = detection_layer(x, input_dim, anchors, num_classes, confidence=0.5)
    out = jax.block_until_ready(out)

    ref = _reference(x, input_dim, anchors, num_classes)
    assert out.shape == (B, G * G * A, C)
    assert jnp.allclose(out, ref, atol=1e-4, rtol=1e-4), "mismatch vs reference"

    print("KERNEL_OK")
</pallas_src>

<mosaic_0001>
module attributes {stable_mosaic.version = 11 : i64} {
  func.func @_detection_kernel(%arg0: i32, %arg1: i32, %arg2: memref<1x27x256xf32, #tpu.memory_space<vmem>>, %arg3: memref<2x256xf32, #tpu.memory_space<vmem>>, %arg4: memref<27x4xf32, #tpu.memory_space<vmem>>, %arg5: memref<1x256x27xf32, #tpu.memory_space<vmem>>) attributes {dimension_semantics = [#tpu.dimension_semantics<parallel>, #tpu.dimension_semantics<parallel>], iteration_bounds = array<i64: 2, 1>, scalar_prefetch = 0 : i64, scratch_operands = 0 : i64, tpu.core_type = #tpu.core_type<tc>, window_params = [{transform_indices = @transform_0, window_bounds = array<i64: 1, 27, 256>}, {transform_indices = @transform_1, window_bounds = array<i64: 2, 256>}, {pipeline_mode = #tpu.pipeline_mode<synchronous>, transform_indices = @transform_2, window_bounds = array<i64: 27, 4>}, {transform_indices = @transform_3, window_bounds = array<i64: 1, 256, 27>}]} {
    %c0 = arith.constant 0 : index
    %c0_0 = arith.constant 0 : index
    %c0_1 = arith.constant 0 : index
    %0 = vector.load %arg2[%c0, %c0_0, %c0_1] : memref<1x27x256xf32, #tpu.memory_space<vmem>>, vector<1x27x256xf32>
    %1 = vector.shape_cast %0 : vector<1x27x256xf32> to vector<27x256xf32>
    %c0_2 = arith.constant 0 : index
    %c0_3 = arith.constant 0 : index
    %2 = vector.load %arg4[%c0_2, %c0_3] : memref<27x4xf32, #tpu.memory_space<vmem>>, vector<27x1xf32>
    %c0_4 = arith.constant 0 : index
    %c1 = arith.constant 1 : index
    %3 = vector.load %arg4[%c0_4, %c1] : memref<27x4xf32, #tpu.memory_space<vmem>>, vector<27x1xf32>
    %c0_5 = arith.constant 0 : index
    %c2 = arith.constant 2 : index
    %4 = vector.load %arg4[%c0_5, %c2] : memref<27x4xf32, #tpu.memory_space<vmem>>, vector<27x1xf32>
    %c0_6 = arith.constant 0 : index
    %c3 = arith.constant 3 : index
    %5 = vector.load %arg4[%c0_6, %c3] : memref<27x4xf32, #tpu.memory_space<vmem>>, vector<27x1xf32>
    %6 = vector.shape_cast %2 : vector<27x1xf32> to vector<27x1xf32>
    %7 = vector.broadcast %6 : vector<27x1xf32> to vector<27x256xf32>
    %cst = arith.constant 5.000000e-01 : f32
    %8 = vector.broadcast %cst : f32 to vector<27x256xf32>
    %9 = arith.cmpf ogt, %7, %8 : vector<27x256xf32>
    %cst_7 = arith.constant 0.000000e+00 : f32
    %10 = vector.broadcast %cst_7 : f32 to vector<27x256xf32>
    %11 = arith.subf %10, %1 : vector<27x256xf32>
    %12 = arith.select %9, %1, %11 : vector<27x256xi1>, vector<27x256xf32>
    %13 = math.exp %12 : vector<27x256xf32>
    %cst_8 = arith.constant 1.000000e+00 : f32
    %14 = vector.broadcast %cst_8 : f32 to vector<27x256xf32>
    %15 = arith.addf %14, %13 : vector<27x256xf32>
    %16 = tpu.reciprocal %15 : vector<27x256xf32> -> vector<27x256xf32>
    %17 = arith.select %9, %13, %16 : vector<27x256xi1>, vector<27x256xf32>
    %c0_9 = arith.constant 0 : index
    %c0_10 = arith.constant 0 : index
    %18 = vector.load %arg3[%c0_9, %c0_10] : memref<2x256xf32, #tpu.memory_space<vmem>>, vector<1x256xf32>
    %c1_11 = arith.constant 1 : index
    %c0_12 = arith.constant 0 : index
    %19 = vector.load %arg3[%c1_11, %c0_12] : memref<2x256xf32, #tpu.memory_space<vmem>>, vector<1x256xf32>
    %20 = vector.broadcast %5 : vector<27x1xf32> to vector<27x256xf32>
    %21 = arith.mulf %17, %20 : vector<27x256xf32>
    %22 = vector.broadcast %3 : vector<27x1xf32> to vector<27x256xf32>
    %23 = vector.broadcast %18 : vector<1x256xf32> to vector<27x256xf32>
    %24 = arith.mulf %22, %23 : vector<27x256xf32>
    %25 = arith.addf %21, %24 : vector<27x256xf32>
    %26 = vector.broadcast %4 : vector<27x1xf32> to vector<27x256xf32>
    %27 = vector.broadcast %19 : vector<1x256xf32> to vector<27x256xf32>
    %28 = arith.mulf %26, %27 : vector<27x256xf32>
    %29 = arith.addf %25, %28 : vector<27x256xf32>
    %30 = tpu.transpose %29, [1, 0] : vector<27x256xf32> -> vector<256x27xf32>
    %c0_13 = arith.constant 0 : index
    %c0_14 = arith.constant 0 : index
    %c0_15 = arith.constant 0 : index
    %31 = vector.load %arg5[%c0_13, %c0_14, %c0_15] : memref<1x256x27xf32, #tpu.memory_space<vmem>>, vector<1x256x27xf32>
    %32 = vector.shape_cast %31 : vector<1x256x27xf32> to vector<256x27xf32>
    %33 = vector.shape_cast %30 : vector<256x27xf32> to vector<1x256x27xf32>
    tpu.vector_store %arg5[%c0_13, %c0_14, %c0_15], %33 {strides = array<i32>} : memref<1x256x27xf32, #tpu.memory_space<vmem>>, vector<1x256x27xf32>,
    return
  }
  func.func @transform_0(%arg0: i32, %arg1: i32) -> (i32, i32, i32) {
    %c0_i32 = arith.constant 0 : i32
    %c0_i32_0 = arith.constant 0 : i32
    return %arg0, %c0_i32, %arg1 : i32, i32, i32
  }
  func.func @transform_1(%arg0: i32, %arg1: i32) -> (i32, i32) {
    %c0_i32 = arith.constant 0 : i32
    %c0_i32_0 = arith.constant 0 : i32
    return %c0_i32, %arg1 : i32, i32
  }
  func.func @transform_2(%arg0: i32, %arg1: i32) -> (i32, i32) {
    %c0_i32 = arith.constant 0 : i32
    %c0_i32_0 = arith.constant 0 : i32
    %c0_i32_1 = arith.constant 0 : i32
    return %c0_i32, %c0_i32_0 : i32, i32
  }
  func.func @transform_3(%arg0: i32, %arg1: i32) -> (i32, i32, i32) {
    %c0_i32 = arith.constant 0 : i32
    %c0_i32_0 = arith.constant 0 : i32
    return %arg0, %arg1, %c0_i32 : i32, i32, i32
  }
}

</mosaic_0001>

<bundles_post_ra>
// kernel: tpu_custom_call.1
= control target key start
LH: loop header
LB: loop body
LE: loop exit
PB: predicated region body
PF: predicated region fallthrough
CT: control target
= control target key end

     0   :  { %s862_s12 = smov 0   ;;  %s864_s13 = smov 0   ;;  %s1267_s0 = inlined_call_operand.vmem [shape: f32[2,27,256], index: 0, kind: input, shape index: {}]   ;;  %s1268_s1 = inlined_call_operand.vmem [shape: f32[2,256], index: 1, kind: input, shape index: {}]   ;;  %s1269_s2 = inlined_call_operand.vmem [shape: f32[27,4], index: 2, kind: input, shape index: {}]   ;;  %s1270_s3 = inlined_call_operand.vmem [shape: f32[2,256,27], index: 3, kind: output, shape index: {}]  }
   0x1   :  { %s866_s14 = smov 0  }
   0x2 LB: > { %s25_s15 = sadd.s32 1, %s832_s13  ;;  %p733_p0 = scmp.ge.s32.totalorder %s836_s14, 1  ;;  %s836_s14 = sphi %s866_s14, %s13_s14   ;;  %s832_s13 = sphi %s864_s13, %s1292_s13   ;;  %s828_s12 = sphi %s862_s12, %s1291_s12  }
   0x3   : > { %p27_p1 = scmp.ge.s32.totalorder %s25_s15, 2  ;;  %p169_p2 = scmp.lt.s32.totalorder %s836_s14, 3 }
   0x5   : > { %s1294_s15 = smov (%p27_p1, %s25_s15), 0  ;;  %p170_p3 = pnand %p733_p0, %p169_p2 }
   0x6   : > { %p207_p4 = scmp.lt.s32.totalorder (!%p170_p3), %s828_s12, 1 }
   0x7   : > { %173 = sbr.rel (%p170_p3) target bundleno = 458 (0x1ca), region = 32 }
   0xc   : > { %v242_v0 = vld [vmem:[%s1269_s2 + $0x10] sm:$0xff]  ;;  %v240_v1 = vld [vmem:[%s1269_s2] sm:$0xff]  ;;  %v838_v2 = vmov 0   ;;  %v839_v3 = vmov 3   ;;  %v243_v4 = vld [vmem:[%s1269_s2 + $0x18] sm:$0x7] }
   0xd   : > { %773 = vset.pattern.permute.xlu1 %v838_v2  ;;  %772 = vset.pattern.permute.xlu0 %v838_v2  ;;  %v241_v5 = vld [vmem:[%s1269_s2 + $0x8] sm:$0xff]  ;;  %v840_v6 = vmov 1   ;;  %v841_v7 = vmov 2   ;;  %s1296_s12 = smov (!%p207_p4, %s828_s12), 1 }
   0xe   : > { %256 = vperm.xlu1 %773, %v242_v0   ;;  %246 = vperm.xlu0 %772, %v240_v1   ;;  %s741_s24 = sshll.u32 %s1296_s12, 6  ;;  %v428_v53 = vld [vmem:[%s1268_s1] ss:$2 sm:$0x3]  ;;  %s742_s5 = sshll.u32 %s1296_s12, 8 }
   0xf   : > { %774 = vset.pattern.permute.xlu2 %v839_v3  ;;  %s214_s27 = scalar_lea.vmem %s1267_s0, %s741_s24  ;;  %v959_v56 = vperm.slane %v428_v53, 0  ;;  %v961_v57 = vperm.slane %v428_v53, 1  ;;  %s1192_s8 = scalar_lea.vmem %s1270_s3, %s742_s5 }
  0x10   : > { %432 = vperm.xlu2 %774, %v240_v1   ;;  %v236_v8 = vld [vmem:[%s214_s27 + $0x20] sm:$0xff]  ;;  %v237_v9 = vld [vmem:[%s214_s27 + $0x28] sm:$0xff]  ;;  %v238_v25 = vld [vmem:[%s214_s27 + $0x30] sm:$0x7] }
  0x11   : > { %v232_v10 = vld [vmem:[%s214_s27] sm:$0xff]  ;;  %v233_v11 = vld [vmem:[%s214_s27 + $0x8] sm:$0xff]  ;;  %v272_v12 = vsub.f32 0.0, %v236_v8  ;;  %v273_v13 = vsub.f32 0.0, %v237_v9  ;;  %v239_v27 = vld [vmem:[%s214_s27 + $0x38] sm:$0x7] }
  0x12   : > { %v268_v14 = vsub.f32 0.0, %v232_v10  ;;  %v269_v15 = vsub.f32 0.0, %v233_v11  ;;  %v234_v29 = vld [vmem:[%s214_s27 + $0x10] sm:$0xff]  ;;  %v274_v30 = vsub.f32 0.0, %v238_v25  ;;  %v235_v31 = vld [vmem:[%s214_s27 + $0x18] sm:$0xff]  ;;  %v275_v32 = vsub.f32 0.0, %v239_v27 }
  0x13   : > { %v270_v35 = vsub.f32 0.0, %v234_v29  ;;  %v271_v36 = vsub.f32 0.0, %v235_v31 }
  0x16   : > { %261 = vperm.xlu1 %773, %v243_v4   ;;  %251 = vperm.xlu0 %772, %v241_v5  }
  0x18   : > { %436 = vperm.xlu2 %774, %v241_v5  }
  0x1e   : > { %776 = vset.pattern.permute.xlu1 %v839_v3  ;;  %775 = vset.pattern.permute.xlu0 %v839_v3 }
  0x1f   : > { %444 = vperm.xlu1 %776, %v243_v4   ;;  %440 = vperm.xlu0 %775, %v242_v0  }
  0x20   : > { %777 = vset.pattern.permute.xlu2 %v840_v6 }
  0x21   : > { %456 = vperm.xlu2 %777, %v240_v1  }
  0x27   : > { %778 = vset.pattern.permute.xlu1 %v841_v7  ;;  %779 = vset.pattern.permute.xlu0 %v841_v7 }
  0x28   : > { %493 = vperm.xlu1 %778, %v240_v1   ;;  %497 = vperm.xlu0 %779, %v241_v5  }
  0x29   : > { %460 = vperm.xlu2 %777, %v241_v5  }
  0x30   : > { %780 = vset.pattern.permute.xlu1 %v840_v6 }
  0x31   : > { %464 = vperm.xlu1 %780, %v242_v0   ;;  %781 = vset.pattern.permute.xlu2 %v841_v7 }
  0x32   : > { %501 = vperm.xlu2 %781, %v242_v0  }
  0x39   : > { %468 = vperm.xlu1 %780, %v243_v4  }
  0x3a   : > { %505 = vperm.xlu2 %781, %v243_v4  }
  0x6a   : > { %v902_v16 = vpop.permute.xlu2 %432 }
  0x72   : > { %v926_v38 = vpop.permute.xlu2 %436 }
  0x7b   : > { %v457_v58 = vpop.permute.xlu2 %456 }
  0x7c   : > { %v971_v2 = vmul.f32 %v959_v56, %v457_v58  ;;  %v974_v3 = vmul.f32 %v961_v57, %v457_v58 }
  0x80   : > { %v904_v17 = vpop.permute.xlu1 %256  ;;  %v906_v18 = vpop.permute.xlu0 %246 }
  0x81   : > { %vm1272_vm0 = vcmp.gt.f32.partialorder %v904_v17, 0.5  ;;  %vm264_vm1 = vcmp.gt.f32.partialorder %v906_v18, 0.5 }
  0x82   : > { %v280_v19 = vsel %vm1272_vm0, %v236_v8, %v272_v12  ;;  %v281_v20 = vsel %vm1272_vm0, %v237_v9, %v273_v13  ;;  %v276_v21 = vsel %vm264_vm1, %v232_v10, %v268_v14  ;;  %v277_v22 = vsel %vm264_vm1, %v233_v11, %v269_v15 }
  0x83   : > { %v292_v23 = vmul.f32 1.442695, %v280_v19  ;;  %v284_v24 = vmul.f32 1.442695, %v276_v21  ;;  %v286_v26 = vmul.f32 1.442695, %v277_v22 }
  0x84   : > { %v294_v28 = vmul.f32 1.442695, %v281_v20  ;;  %v738_v19 = vld [vmem:[%s1268_s1 + $0x1] ss:$2 sm:$0x3] }
  0x85   : > { %782 = vpow2.f32 %v292_v23 }
  0x86   : > { %784 = vpow2.f32 %v284_v24 }
  0x87   : > { %786 = vpow2.f32 %v286_v26 }
  0x88   : > { %v918_v33 = vpop.permute.xlu1 %261  ;;  %v920_v34 = vpop.permute.xlu0 %251  ;;  %788 = vpow2.f32 %v294_v28  ;;  %v1012_v28 = vperm.slane %v738_v19, 0 }
  0x89   : > { %vm1271_vm2 = vcmp.gt.f32.partialorder %v918_v33, 0.5  ;;  %vm265_vm3 = vcmp.gt.f32.partialorder %v920_v34, 0.5 }
  0x8a   : > { %v282_v37 = vsel %vm1271_vm2, %v238_v25, %v274_v30  ;;  %v283_v40 = vsel %vm1271_vm2, %v239_v27, %v275_v32  ;;  %v278_v43 = vsel %vm265_vm3, %v234_v29, %v270_v35  ;;  %v279_v45 = vsel %vm265_vm3, %v235_v31, %v271_v36  ;;  %v461_v35 = vpop.permute.xlu2 %460 }
  0x8b   : > { %v928_v39 = vpop.eup %782  ;;  %v296_v41 = vmul.f32 1.442695, %v282_v37  ;;  %v298_v48 = vmul.f32 1.442695, %v283_v40  ;;  %v288_v51 = vmul.f32 1.442695, %v278_v43  ;;  %v1029_v43 = vmul.f32 %v959_v56, %v461_v35 }
  0x8c   : > { %v933_v42 = vadd.f32 1.0, %v928_v39  ;;  %v937_v44 = vpop.eup %784  ;;  %v290_v52 = vmul.f32 1.442695, %v279_v45  ;;  %v1032_v45 = vmul.f32 %v961_v57, %v461_v35 }
  0x8d   : > { %790 = vpow2.f32 %v296_v41  ;;  %v941_v46 = vpop.eup %786  ;;  %v300_v47 = vadd.f32 1.0, %v937_v44  ;;  %v1026_v41 = vperm.slane %v738_v19, 1 }
  0x8e   : > { %v944_v49 = vpop.eup %788  ;;  %792 = vrcp.f32 %v933_v42  ;;  %v948_v50 = vadd.f32 1.0, %v941_v46  ;;  %v373_v63 = vand.u32 2147483647, %v933_v42  ;;  %v375_v29 = vand.u32 2147483648, %v933_v42 }
  0x8f   : > { %794 = vrcp.f32 %v300_v47  ;;  %v955_v54 = vadd.f32 1.0, %v944_v49  ;;  %v317_v62 = vand.u32 2147483647, %v300_v47  ;;  %vm313_vm4 = vweird.f32 %v300_v47 }
  0x90   : > { %796 = vrcp.f32 %v948_v50  ;;  %v319_v5 = vand.u32 2147483648, %v300_v47  ;;  %vm327_vm5 = vweird.f32 %v948_v50  ;;  %v331_v7 = vand.u32 2147483647, %v948_v50 }
  0x91   : > { %798 = vpow2.f32 %v298_v48  ;;  %v333_v10 = vand.u32 2147483648, %v948_v50  ;;  %vm990_vm6 = vcmp.eq.f32.partialorder %v317_v62, 8.507059e+37  ;;  %v1006_v23 = vpop.permute.xlu1 %444  ;;  %vm369_vm11 = vweird.f32 %v933_v42  ;;  %v1073_v35 = vpop.permute.xlu0 %440 }
  0x92   : > { %800 = vpow2.f32 %v288_v51  ;;  %v320_v25 = vor.u32 1.1754944e-38, %v319_v5  ;;  %vm1016_vm10 = vcmp.eq.f32.partialorder %v331_v7, 8.507059e+37 }
  0x93   : > { %v957_v55 = vpop.eup %790  ;;  %802 = vpow2.f32 %v290_v52  ;;  %v334_v32 = vor.u32 1.1754944e-38, %v333_v10 }
  0x94   : > { %v963_v59 = vpop.eup %792  ;;  %v966_v60 = vadd.f32 1.0, %v957_v55  ;;  %804 = vrcp.f32 %v955_v54 }
  0x95   : > { %v795_v61 = vpop.eup %794  ;;  %v365_v20 = vmul.f32 %v963_v59, %v933_v42  ;;  %vm370_vm13 = vweird.f32 %v963_v59 }
  0x96   : > { %v797_v0 = vpop.eup %796  ;;  %v309_v1 = vmul.f32 %v795_v61, %v300_v47  ;;  %806 = vrcp.f32 %v966_v60  ;;  %vm314_vm7 = vweird.f32 %v795_v61  ;;  %v401_v51 = vand.u32 2147483647, %v966_v60 }
  0x97   : > { %v976_v4 = vpop.eup %798  ;;  %v323_v6 = vmul.f32 %v797_v0, %v948_v50  ;;  %vm328_vm8 = vweird.f32 %v797_v0  ;;  %vm315_vm9 = vmor %vm313_vm4, %vm314_vm7  ;;  %v366_v36 = vsub.f32 1.0, %v365_v20  ;;  %v403_v58 = vand.u32 2147483648, %v966_v60 }
  0x98   : > { %v981_v8 = vpop.eup %800  ;;  %v310_v9 = vsub.f32 1.0, %v309_v1  ;;  %v985_v11 = vadd.f32 1.0, %v976_v4  ;;  %vm329_vm12 = vmor %vm327_vm5, %vm328_vm8  ;;  %vm397_vm8 = vweird.f32 %v966_v60 }
  0x99   : > { %v988_v12 = vpop.eup %802  ;;  %v324_v14 = vsub.f32 1.0, %v323_v6  ;;  %v995_v15 = vadd.f32 1.0, %v981_v8  ;;  %v367_v6 = vmul.f32 %v963_v59, %v366_v36 }
  0x9a   : > { %v311_v21 = vmul.f32 %v795_v61, %v310_v9  ;;  %808 = vrcp.f32 %v985_v11  ;;  %v1004_v22 = vadd.f32 1.0, %v988_v12  ;;  %v1008_v24 = vpop.eup %804 }
  0x9b   : > { %v325_v26 = vmul.f32 %v797_v0, %v324_v14  ;;  %810 = vrcp.f32 %v995_v15  ;;  %v379_v13 = vmul.f32 %v1008_v24, %v955_v54  ;;  %vm341_vm14 = vweird.f32 %v995_v15 }
  0x9c   : > { %v312_v27 = vadd.f32 %v795_v61, %v311_v21  ;;  %812 = vrcp.f32 %v1004_v22  ;;  %v1021_v37 = vpop.eup %806  ;;  %v345_v18 = vand.u32 2147483647, %v995_v15  ;;  %vm355_vm15 = vweird.f32 %v1004_v22  ;;  %v494_v21 = vpop.permute.xlu1 %493 }
  0x9d   : > { %v326_v30 = vadd.f32 %v797_v0, %v325_v26  ;;  %v393_v5 = vmul.f32 %v1021_v37, %v966_v60  ;;  %vm384_vm4 = vweird.f32 %v1008_v24  ;;  %vm398_vm2 = vweird.f32 %v1021_v37 }
  0x9e   : > { %v316_v40 = vsel %vm315_vm9, %v795_v61, %v312_v27  ;;  %v1046_v61 = vor.u32 1.1754944e-38, %v375_v29  ;;  %v513_v29 = vmul.f32 %v1012_v28, %v494_v21  ;;  %vm1083_vm9 = vcmp.eq.f32.partialorder %v345_v18, 8.507059e+37 }
  0x9f   : > { %v321_v47 = vsel %vm990_vm6, %v320_v25, %v316_v40  ;;  %v330_v48 = vsel %vm329_vm12, %v797_v0, %v326_v30  ;;  %v394_v26 = vsub.f32 1.0, %v393_v5  ;;  %vm1077_vm6 = vcmp.eq.f32.partialorder %v373_v63, 8.507059e+37 }
  0xa0   : > { %v1038_v52 = vpop.eup %808  ;;  %v335_v50 = vsel %vm1016_vm10, %v334_v32, %v330_v48  ;;  %v420_v53 = vsel %vm264_vm1, %v937_v44, %v321_v47  ;;  %v514_v32 = vmul.f32 %v1026_v41, %v494_v21  ;;  %v359_v40 = vand.u32 2147483647, %v1004_v22  ;;  %vm1092_vm10 = vmor %vm369_vm11, %vm370_vm13 }
  0xa1   : > { %v811_v62 = vpop.eup %810  ;;  %v421_v0 = vsel %vm264_vm1, %v941_v46, %v335_v50  ;;  %v447_v1 = vmul.f32 %v902_v16, %v420_v53  ;;  %v407_v10 = vmul.f32 %v1038_v52, %v985_v11  ;;  %v347_v46 = vand.u32 2147483648, %v995_v15 }
  0xa2   : > { %v813_v7 = vpop.eup %812  ;;  %v448_v9 = vmul.f32 %v902_v16, %v421_v0  ;;  %v337_v44 = vmul.f32 %v811_v62, %v995_v15  ;;  %v361_v16 = vand.u32 2147483648, %v1004_v22  ;;  %vm383_vm1 = vweird.f32 %v955_v54 }
  0xa3   : > { %v351_v14 = vmul.f32 %v813_v7, %v1004_v22  ;;  %v484_v20 = vadd.f32 %v971_v2, %v447_v1  ;;  %vm342_vm5 = vweird.f32 %v811_v62  ;;  %v408_v31 = vsub.f32 1.0, %v407_v10 }
  0xa4   : > { %v338_v19 = vsub.f32 1.0, %v337_v44  ;;  %v485_v27 = vadd.f32 %v974_v3, %v448_v9  ;;  %vm356_vm7 = vweird.f32 %v813_v7  ;;  %v368_v53 = vadd.f32 %v963_v59, %v367_v6  ;;  %vm343_vm12 = vmor %vm341_vm14, %vm342_vm5  ;;  %v465_v21 = vpop.permute.xlu1 %464 }
  0xa5   : > { %v352_v25 = vsub.f32 1.0, %v351_v14  ;;  %v521_v3 = vadd.f32 %v513_v29, %v484_v20  ;;  %v348_v0 = vor.u32 1.1754944e-38, %v347_v46  ;;  %v380_v5 = vsub.f32 1.0, %v379_v13  ;;  %vm357_vm0 = vmor %vm355_vm15, %vm356_vm7 }
  0xa6   : > { %v339_v30 = vmul.f32 %v811_v62, %v338_v19  ;;  %v522_v50 = vadd.f32 %v514_v32, %v485_v27  ;;  %v362_v42 = vor.u32 1.1754944e-38, %v361_v16  ;;  %v395_v6 = vmul.f32 %v1021_v37, %v394_v26  ;;  %vm1138_vm14 = vmor %vm397_vm8, %vm398_vm2 }
  0xa7   : > { %v353_v36 = vmul.f32 %v813_v7, %v352_v25  ;;  %529 = vxpose.xlu0.b32.start [1/4] (short) %v521_v3, 128  ;;  %v409_v44 = vmul.f32 %v1038_v52, %v408_v31  ;;  %vm360_vm11 = vcmp.eq.f32.partialorder %v359_v40, 8.507059e+37  ;;  %v372_v13 = vsel %vm1092_vm10, %v963_v59, %v368_v53  ;;  %v498_v25 = vpop.permute.xlu0 %497 }
  0xa8   : > { %v340_v47 = vadd.f32 %v811_v62, %v339_v30  ;;  %561 = vxpose.xlu1.b32.start [1/4] (short) %v522_v50, 128  ;;  %v381_v18 = vmul.f32 %v1008_v24, %v380_v5  ;;  %v387_v46 = vand.u32 2147483647, %v955_v54  ;;  %v389_v19 = vand.u32 2147483648, %v955_v54 }
  0xa9   : > { %v354_v1 = vadd.f32 %v813_v7, %v353_v36  ;;  %v396_v16 = vadd.f32 %v1021_v37, %v395_v6  ;;  %vm411_vm13 = vweird.f32 %v985_v11  ;;  %v415_v29 = vand.u32 2147483647, %v985_v11  ;;  %v502_v36 = vpop.permute.xlu2 %501 }
  0xaa   : > { %v344_v9 = vsel %vm343_vm12, %v811_v62, %v340_v47  ;;  %v382_v20 = vadd.f32 %v1008_v24, %v381_v18  ;;  %vm388_vm15 = vcmp.eq.f32.partialorder %v387_v46, 8.507059e+37  ;;  %v515_v31 = vmul.f32 %v1012_v28, %v498_v25 }
  0xab   : > { %v349_v15 = vsel %vm1083_vm9, %v348_v0, %v344_v9  ;;  %v358_v10 = vsel %vm357_vm0, %v813_v7, %v354_v1  ;;  %vm412_vm0 = vweird.f32 %v1038_v52  ;;  %v516_v32 = vmul.f32 %v1026_v41, %v498_v25 }
  0xac   : > { %v363_v62 = vsel %vm360_vm11, %v362_v42, %v358_v10  ;;  %v422_v22 = vsel %vm265_vm3, %v981_v8, %v349_v15  ;;  %v410_v8 = vadd.f32 %v1038_v52, %v409_v44  ;;  %vm1147_vm5 = vmor %vm411_vm13, %vm412_vm0  ;;  %vm1287_vm2 = vcmp.gt.f32.partialorder %v904_v17, 0.5 }
  0xad   : > { %v423_v14 = vsel %vm265_vm3, %v988_v12, %v363_v62  ;;  %v449_v7 = vmul.f32 %v926_v38, %v422_v22  ;;  %v377_v12 = vsel %vm1077_vm6, %v1046_v61, %v372_v13  ;;  %vm385_vm3 = vmor %vm383_vm1, %vm384_vm4  ;;  %v480_v40 = vmul.f32 %v959_v56, %v465_v21 }
  0xae   : > { %v450_v59 = vmul.f32 %v926_v38, %v423_v14  ;;  %v390_v38 = vor.u32 1.1754944e-38, %v389_v19  ;;  %v386_v61 = vsel %vm385_vm3, %v1008_v24, %v382_v20  ;;  %v414_v24 = vsel %vm1147_vm5, %v1038_v52, %v410_v8  ;;  %vm1288_vm1 = vmmov %vm1287_vm2 }
  0xaf   : > { %v486_v34 = vadd.f32 %v1029_v43, %v449_v7  ;;  %v417_v43 = vand.u32 2147483648, %v985_v11  ;;  %v424_v2 = vsel %vm1287_vm2, %v928_v39, %v377_v12  ;;  %v481_v3 = vmul.f32 %v961_v57, %v465_v21 }
  0xb0   : > { %v487_v27 = vadd.f32 %v1032_v45, %v450_v59  ;;  %v391_v30 = vsel %vm388_vm15, %v390_v38, %v386_v61  ;;  %v400_v45 = vsel %vm1138_vm14, %v1021_v37, %v396_v16  ;;  %v404_v37 = vor.u32 1.1754944e-38, %v403_v58  ;;  %v469_v58 = vpop.permute.xlu1 %468 }
  0xb1   : > { %v425_v11 = vsel %vm1288_vm1, %v944_v49, %v391_v30  ;;  %v523_v47 = vadd.f32 %v515_v31, %v486_v34  ;;  %v418_v50 = vor.u32 1.1754944e-38, %v417_v43  ;;  %vm402_vm4 = vcmp.eq.f32.partialorder %v401_v51, 8.507059e+37  ;;  %v506_v6 = vpop.permute.xlu2 %505 }
  0xb2   : > { %v524_v48 = vadd.f32 %v516_v32, %v487_v27  ;;  %vm416_vm6 = vcmp.eq.f32.partialorder %v415_v29, 8.507059e+37  ;;  %v451_v39 = vmul.f32 %v1073_v35, %v424_v2  ;;  %v452_v17 = vmul.f32 %v1073_v35, %v425_v11 }
  0xb3   : > { %530 = vxpose.xlu0.b32.cont [2/4] (short) %v523_v47, 128  ;;  %v405_v49 = vsel %vm402_vm4, %v404_v37, %v400_v45  ;;  %v419_v52 = vsel %vm416_vm6, %v418_v50, %v414_v24  ;;  %v517_v0 = vmul.f32 %v1012_v28, %v502_v36  ;;  %v518_v1 = vmul.f32 %v1026_v41, %v502_v36 }
  0xb4   : > { %562 = vxpose.xlu1.b32.cont [2/4] (short) %v524_v48, 128  ;;  %v488_v53 = vadd.f32 %v480_v40, %v451_v39  ;;  %v489_v63 = vadd.f32 %v481_v3, %v452_v17  ;;  %vm1289_vm7 = vcmp.gt.f32.partialorder %v918_v33, 0.5  ;;  %v482_v9 = vmul.f32 %v959_v56, %v469_v58 }
  0xb5   : > { %v426_v60 = vsel %vm1289_vm7, %v957_v55, %v405_v49  ;;  %vm1290_vm8 = vmmov %vm1289_vm7  ;;  %v483_v42 = vmul.f32 %v961_v57, %v469_v58  ;;  %v519_v13 = vmul.f32 %v1012_v28, %v506_v6  ;;  %v520_v33 = vmul.f32 %v1026_v41, %v506_v6 }
  0xb6   : > { %v427_v51 = vsel %vm1290_vm8, %v976_v4, %v419_v52  ;;  %v525_v35 = vadd.f32 %v517_v0, %v488_v53  ;;  %v526_v5 = vadd.f32 %v518_v1, %v489_v63  ;;  %v453_v44 = vmul.f32 %v1006_v23, %v426_v60 }
  0xb7   : > { %v454_v15 = vmul.f32 %v1006_v23, %v427_v51  ;;  %vm593_vm9 = vcmask 220160  }
  0xb8   : > { %v490_v10 = vadd.f32 %v482_v9, %v453_v44 }
  0xb9   : > { %v491_v55 = vadd.f32 %v483_v42, %v454_v15 }
  0xba   : > { %v527_v4 = vadd.f32 %v519_v13, %v490_v10 }
  0xbb   : > { %531 = vxpose.xlu0.b32.cont [3/4] (short) %v525_v35, 128  ;;  %v528_v62 = vadd.f32 %v520_v33, %v491_v55 }
  0xbc   : > { %563 = vxpose.xlu1.b32.cont [3/4] (short) %v526_v5, 128 }
  0xc3   : > { %532 = vxpose.xlu0.b32.end [4/4] (short) %v527_v4, 128 }
  0xc4   : > { %564 = vxpose.xlu1.b32.end [4/4] (short) %v528_v62, 128 }
 0x14f   : > { %v545_v57 = vpop.trf.xlu0 }
 0x150   : > { %v577_v56 = vpop.trf.xlu1  ;;  %594 = vst.msk [vmem:[%s1192_s8] sm:$0xff] %vm593_vm9, %v545_v57 }
 0x151   : > { %610 = vst.msk [vmem:[%s1192_s8 + $0x80] sm:$0xff] %vm593_vm9, %v577_v56 }
 0x157   : > { %v546_v28 = vpop.trf.xlu0 }
 0x158   : > { %v578_v23 = vpop.trf.xlu1  ;;  %595 = vst.msk [vmem:[%s1192_s8 + $0x8] sm:$0xff] %vm593_vm9, %v546_v28 }
 0x159   : > { %611 = vst.msk [vmem:[%s1192_s8 + $0x88] sm:$0xff] %vm593_vm9, %v578_v23 }
 0x15f   : > { %v547_v22 = vpop.trf.xlu0 }
 0x160   : > { %v579_v41 = vpop.trf.xlu1  ;;  %596 = vst.msk [vmem:[%s1192_s8 + $0x10] sm:$0xff] %vm593_vm9, %v547_v22 }
 0x161   : > { %612 = vst.msk [vmem:[%s1192_s8 + $0x90] sm:$0xff] %vm593_vm9, %v579_v41 }
 0x167   : > { %v548_v46 = vpop.trf.xlu0 }
 0x168   : > { %v580_v18 = vpop.trf.xlu1  ;;  %597 = vst.msk [vmem:[%s1192_s8 + $0x18] sm:$0xff] %vm593_vm9, %v548_v46 }
 0x169   : > { %613 = vst.msk [vmem:[%s1192_s8 + $0x98] sm:$0xff] %vm593_vm9, %v580_v18 }
 0x16f   : > { %v549_v7 = vpop.trf.xlu0 }
 0x170   : > { %v581_v14 = vpop.trf.xlu1  ;;  %598 = vst.msk [vmem:[%s1192_s8 + $0x20] sm:$0xff] %vm593_vm9, %v549_v7 }
 0x171   : > { %614 = vst.msk [vmem:[%s1192_s8 + $0xa0] sm:$0xff] %vm593_vm9, %v581_v14 }
 0x177   : > { %v550_v59 = vpop.trf.xlu0 }
 0x178   : > { %v582_v19 = vpop.trf.xlu1  ;;  %599 = vst.msk [vmem:[%s1192_s8 + $0x28] sm:$0xff] %vm593_vm9, %v550_v59 }
 0x179   : > { %615 = vst.msk [vmem:[%s1192_s8 + $0xa8] sm:$0xff] %vm593_vm9, %v582_v19 }
 0x17f   : > { %v551_v8 = vpop.trf.xlu0 }
 0x180   : > { %v583_v16 = vpop.trf.xlu1  ;;  %600 = vst.msk [vmem:[%s1192_s8 + $0x30] sm:$0xff] %vm593_vm9, %v551_v8 }
 0x181   : > { %616 = vst.msk [vmem:[%s1192_s8 + $0xb0] sm:$0xff] %vm593_vm9, %v583_v16 }
 0x187   : > { %v552_v21 = vpop.trf.xlu0 }
 0x188   : > { %v584_v20 = vpop.trf.xlu1  ;;  %601 = vst.msk [vmem:[%s1192_s8 + $0x38] sm:$0xff] %vm593_vm9, %v552_v21 }
 0x189   : > { %617 = vst.msk [vmem:[%s1192_s8 + $0xb8] sm:$0xff] %vm593_vm9, %v584_v20 }
 0x18f   : > { %v553_v34 = vpop.trf.xlu0 }
 0x190   : > { %v585_v25 = vpop.trf.xlu1  ;;  %602 = vst.msk [vmem:[%s1192_s8 + $0x40] sm:$0xff] %vm593_vm9, %v553_v34 }
 0x191   : > { %618 = vst.msk [vmem:[%s1192_s8 + $0xc0] sm:$0xff] %vm593_vm9, %v585_v25 }
 0x197   : > { %v554_v38 = vpop.trf.xlu0 }
 0x198   : > { %v586_v12 = vpop.trf.xlu1  ;;  %603 = vst.msk [vmem:[%s1192_s8 + $0x48] sm:$0xff] %vm593_vm9, %v554_v38 }
 0x199   : > { %619 = vst.msk [vmem:[%s1192_s8 + $0xc8] sm:$0xff] %vm593_vm9, %v586_v12 }
 0x19f   : > { %v555_v43 = vpop.trf.xlu0 }
 0x1a0   : > { %v587_v26 = vpop.trf.xlu1  ;;  %604 = vst.msk [vmem:[%s1192_s8 + $0x50] sm:$0xff] %vm593_vm9, %v555_v43 }
 0x1a1   : > { %620 = vst.msk [vmem:[%s1192_s8 + $0xd0] sm:$0xff] %vm593_vm9, %v587_v26 }
 0x1a7   : > { %v556_v61 = vpop.trf.xlu0 }
 0x1a8   : > { %v588_v27 = vpop.trf.xlu1  ;;  %605 = vst.msk [vmem:[%s1192_s8 + $0x58] sm:$0xff] %vm593_vm9, %v556_v61 }
 0x1a9   : > { %621 = vst.msk [vmem:[%s1192_s8 + $0xd8] sm:$0xff] %vm593_vm9, %v588_v27 }
 0x1af   : > { %v557_v29 = vpop.trf.xlu0 }
 0x1b0   : > { %v589_v54 = vpop.trf.xlu1  ;;  %606 = vst.msk [vmem:[%s1192_s8 + $0x60] sm:$0xff] %vm593_vm9, %v557_v29 }
 0x1b1   : > { %622 = vst.msk [vmem:[%s1192_s8 + $0xe0] sm:$0xff] %vm593_vm9, %v589_v54 }
 0x1b7   : > { %v558_v31 = vpop.trf.xlu0 }
 0x1b8   : > { %v590_v30 = vpop.trf.xlu1  ;;  %607 = vst.msk [vmem:[%s1192_s8 + $0x68] sm:$0xff] %vm593_vm9, %v558_v31 }
 0x1b9   : > { %623 = vst.msk [vmem:[%s1192_s8 + $0xe8] sm:$0xff] %vm593_vm9, %v590_v30 }
 0x1bf   : > { %v559_v45 = vpop.trf.xlu0 }
 0x1c0   : > { %v591_v32 = vpop.trf.xlu1  ;;  %608 = vst.msk [vmem:[%s1192_s8 + $0x70] sm:$0xff] %vm593_vm9, %v559_v45 }
 0x1c1   : > { %624 = vst.msk [vmem:[%s1192_s8 + $0xf0] sm:$0xff] %vm593_vm9, %v591_v32 }
 0x1c7   : > { %v560_v2 = vpop.trf.xlu0 }
 0x1c8   : > { %v592_v24 = vpop.trf.xlu1  ;;  %609 = vst.msk [vmem:[%s1192_s8 + $0x78] sm:$0xff] %vm593_vm9, %v560_v2 }
 0x1c9   : > { %625 = vst.msk [vmem:[%s1192_s8 + $0xf8] sm:$0xff] %vm593_vm9, %v592_v24 }
 0x1ca PF: > { %s13_s14 = sadd.s32 1, %s836_s14   ;;  %s1291_s12 = smov %s832_s13 }
 0x1cb   : > { %p10_p5 = scmp.ge.s32.totalorder %s13_s14, 4   ;;  %s1292_s13 = smov %s1294_s15 }
 0x1cd   :  { %12 = sbr.rel (!%p10_p5) target bundleno = 2 (0x2), region = 66 }

</bundles_post_ra>
